<compile_context>
chip_gen: v7x
topology: tpu7x:2x2x1
jax: 0.10.0
libtpu: 0.0.40
codegen_flags: <defaults>
</compile_context>

<pallas_src>
import functools

import jax
import jax.numpy as jnp
from jax.experimental import pallas as pl
from jax.experimental.pallas import tpu as pltpu


# ---------------------------------------------------------------------------
# Hardware-aware budgets
# ---------------------------------------------------------------------------
def _vmem_capacity_bytes():
    try:
        info = pltpu.get_tpu_info()
        cap = getattr(info, "vmem_capacity_bytes", None)
        if cap:
            return int(cap)
    except Exception:
        pass
    return 128 * 1024 * 1024      # v5e / v6e default


def _vmem_limit(needed_bytes, cap):
    # Generous but strictly below physical capacity; 32 MiB floor for slack.
    hi = int(cap * 0.75)
    return int(min(hi, max(32 * 1024 * 1024, 2 * needed_bytes)))


def _const_spec(shape, grid_ndim):
    zeros = (0,) * len(shape)
    if grid_ndim == 1:
        return pl.BlockSpec(shape, lambda n: zeros)
    return pl.BlockSpec(shape, lambda n, t: zeros)


def _choose_h_tile(C, H, W, itemsize, max_block_bytes):
    """Largest tile height TH (divisor of H) with lane-dense (TH*W)%128==0
    (or TH==H) whose (C, TH*W) block fits max_block_bytes; else the smallest
    legal tile (graceful degradation)."""
    divisors = [d for d in range(H, 0, -1) if H % d == 0]            # descending
    legal = [th for th in divisors if th == H or (th * W) % 128 == 0]
    for th in legal:
        if C * th * W * itemsize <= max_block_bytes:
            return th
    return legal[-1]


# ---------------------------------------------------------------------------
# Fused single-pass kernel (grid = (N,)): pools + maps + modulation.
# ---------------------------------------------------------------------------
def _coord_att_fused_kernel(
    x_ref,        # (1, C, H*W)   lane-dense flat image
    p_ref,        # (H*W, H+W)    pooling matrix [E_h^T/W | E_w^T/H]
    eh_ref,       # (H, H*W)      one-hot expansion  e_h[h, j] = (j//W == h)
    ew_ref,       # (W, H*W)      one-hot expansion  e_w[w, j] = (j%W  == w)
    w1_ref,       # (mip, C)      conv1 weight (BN folded)
    b1_ref,       # (mip, 1)      conv1 bias   (BN folded)
    wh_ref,       # (C, mip)
    bh_ref,       # (C, 1)
    ww_ref,       # (C, mip)
    bw_ref,       # (C, 1)
    out_ref,      # (1, C, H*W)
    *, H,
):
    x = x_ref[0]                                                     # (C, H*W)

    # Both pools in one MXU matmul (no in-kernel reshape / XLU reductions,
    # no f32 copy of the whole slab).
    pooled = jnp.dot(x, p_ref[...], preferred_element_type=jnp.float32)   # (C, H+W)

    # conv1 (BN folded) + h_swish on the tiny pooled tensor.
    y = jnp.dot(w1_ref[...], pooled,
                preferred_element_type=jnp.float32) + b1_ref[...]         # (mip, H+W)
    y = y * (jnp.clip(y + 3.0, 0.0, 6.0) * (1.0 / 6.0))                   # h_swish

    a_h = jax.nn.sigmoid(
        jnp.dot(wh_ref[...], y[:, :H],
                preferred_element_type=jnp.float32) + bh_ref[...])        # (C, H)
    a_w = jax.nn.sigmoid(
        jnp.dot(ww_ref[...], y[:, H:],
                preferred_element_type=jnp.float32) + bw_ref[...])        # (C, W)

    # Lane-dense expansion back to (C, H*W) via one-hot matmuls.
    a_h_exp = jnp.dot(a_h, eh_ref[...], preferred_element_type=jnp.float32)
    a_w_exp = jnp.dot(a_w, ew_ref[...], preferred_element_type=jnp.float32)

    out_ref[0] = (x.astype(jnp.float32) * a_h_exp * a_w_exp).astype(out_ref.dtype)


# ---------------------------------------------------------------------------
# Fallback pass 1: pooled attention maps, H-tiled (accumulate pooling matmul).
# ---------------------------------------------------------------------------
def _coord_att_maps_kernel(
    x_ref,        # (1, C, TH*W)
    p_ref,        # (TH*W, H+W)   per-tile rows of the pooling matrix
    w1_ref, b1_ref, wh_ref, bh_ref, ww_ref, bw_ref,
    a_h_ref,      # (1, C, H)
    a_w_ref,      # (1, C, W)
    acc_ref,      # (C, H+W) f32 scratch
    *, H,
):
    t = pl.program_id(1)

    @pl.when(t == 0)
    def _():
        acc_ref[...] = jnp.zeros_like(acc_ref)

    acc_ref[...] += jnp.dot(x_ref[0], p_ref[...],
                            preferred_element_type=jnp.float32)

    @pl.when(t == pl.num_programs(1) - 1)
    def _():
        y = jnp.dot(w1_ref[...], acc_ref[...],
                    preferred_element_type=jnp.float32) + b1_ref[...]
        y = y * (jnp.clip(y + 3.0, 0.0, 6.0) * (1.0 / 6.0))
        a_h_ref[0] = jax.nn.sigmoid(
            jnp.dot(wh_ref[...], y[:, :H],
                    preferred_element_type=jnp.float32) + bh_ref[...])
        a_w_ref[0] = jax.nn.sigmoid(
            jnp.dot(ww_ref[...], y[:, H:],
                    preferred_element_type=jnp.float32) + bw_ref[...])


# ---------------------------------------------------------------------------
# Fallback pass 2: out = x * a_h * a_w, lane-dense, H-tiled.
# Expansion matrices are host-built and BlockSpec-sliced per tile (hoisted).
# ---------------------------------------------------------------------------
def _coord_att_modulate_kernel(x_ref, a_h_ref, a_w_ref, eh_ref, ew_ref, out_ref):
    a_h_exp = jnp.dot(a_h_ref[0], eh_ref[...], preferred_element_type=jnp.float32)
    a_w_exp = jnp.dot(a_w_ref[0], ew_ref[...], preferred_element_type=jnp.float32)
    out_ref[0] = (x_ref[0].astype(jnp.float32) * a_h_exp * a_w_exp
                  ).astype(out_ref.dtype)


# ---------------------------------------------------------------------------
# Wrapper
# ---------------------------------------------------------------------------
def coord_att(x, params, eps=1e-5, force_two_pass=False, max_block_bytes=None):
    N, C, H, W = x.shape
    HW = H * W
    mip = params["w1"].shape[0]
    cap = _vmem_capacity_bytes()

    # Fold BatchNorm (eval mode) running stats into conv1 on the host.
    bn_scale = params["bn_gamma"] / jnp.sqrt(params["bn_var"] + eps)
    w1f = (bn_scale[:, None] * params["w1"]).astype(jnp.float32)          # (mip, C)
    b1f = (bn_scale * params["b1"] + params["bn_beta"]
           - params["bn_mean"] * bn_scale).reshape(mip, 1).astype(jnp.float32)

    param_args = (
        w1f, b1f,
        params["wh"].astype(jnp.float32),
        params["bh"].reshape(C, 1).astype(jnp.float32),
        params["ww"].astype(jnp.float32),
        params["bw"].reshape(C, 1).astype(jnp.float32),
    )

    # Host-built pooling / expansion matrices (keeps iota, //, %, casts off the
    # per-step VPU path; they are exact 0/1 or 1/W, 1/H entries).
    j = jnp.arange(HW)
    e_h = (j[None, :] // W == jnp.arange(H)[:, None]).astype(jnp.float32)  # (H, HW)
    e_w = (j[None, :] % W == jnp.arange(W)[:, None]).astype(jnp.float32)   # (W, HW)
    pool_mat = jnp.concatenate([e_h.T / W, e_w.T / H], axis=1).astype(x.dtype)  # (HW, H+W)

    x_flat = x.reshape(N, C, HW)     # free reshape of contiguous NCHW

    # ---- Fused single-pass path when one image slab fits VMEM comfortably ----
    fused_bytes = (4 * C * HW * x.dtype.itemsize          # in + out blocks, 2x buffered
                   + 3 * C * HW * 4                       # f32 intermediates
                   + (HW * (H + W) + (H + W) * HW) * 4)   # pool + expansion matrices
    use_fused = (not force_two_pass) and fused_bytes <= int(cap * 0.45)

    if use_fused:
        kernel = functools.partial(_coord_att_fused_kernel, H=H)
        out_flat = pl.pallas_call(
            kernel,
            out_shape=jax.ShapeDtypeStruct((N, C, HW), x.dtype),
            grid_spec=pltpu.PrefetchScalarGridSpec(
                num_scalar_prefetch=0,
                grid=(N,),
                in_specs=[pl.BlockSpec((1, C, HW), lambda n: (n, 0, 0)),
                          _const_spec(pool_mat.shape, 1),
                          _const_spec(e_h.shape, 1),
                          _const_spec(e_w.shape, 1)]
                         + [_const_spec(a.shape, 1) for a in param_args],
                out_specs=pl.BlockSpec((1, C, HW), lambda n: (n, 0, 0)),
            ),
            compiler_params=pltpu.CompilerParams(
                dimension_semantics=("parallel",),
                vmem_limit_bytes=_vmem_limit(fused_bytes, cap)),
        )(x_flat, pool_mat, e_h, e_w, *param_args)
        # TODO(synk): add input_output_aliases={0: 0} when callers donate x
        # (without donation XLA inserts a defensive copy, adding HBM traffic).
        return out_flat.reshape(N, C, H, W)

    # ---- Fallback: two passes, lane-dense + H-tiled ----
    if max_block_bytes is None:
        max_block_bytes = max(512 * 1024, int(cap * 0.08))
    th = _choose_h_tile(C, H, W, x.dtype.itemsize, max_block_bytes)
    n_t = H // th
    blk = C * th * W * x.dtype.itemsize

    # Pass 1: attention maps a_h (N,C,H), a_w (N,C,W).
    maps_kernel = functools.partial(_coord_att_maps_kernel, H=H)
    a_h, a_w = pl.pallas_call(
        maps_kernel,
        out_shape=(jax.ShapeDtypeStruct((N, C, H), jnp.float32),
                   jax.ShapeDtypeStruct((N, C, W), jnp.float32)),
        grid_spec=pltpu.PrefetchScalarGridSpec(
            num_scalar_prefetch=0,
            grid=(N, n_t),
            in_specs=[pl.BlockSpec((1, C, th * W), lambda n, t: (n, 0, t)),
                      pl.BlockSpec((th * W, H + W), lambda n, t: (t, 0))]
                     + [_const_spec(a.shape, 2) for a in param_args],
            out_specs=[pl.BlockSpec((1, C, H), lambda n, t: (n, 0, 0)),
                       pl.BlockSpec((1, C, W), lambda n, t: (n, 0, 0))],
            scratch_shapes=[pltpu.VMEM((C, H + W), jnp.float32)]),
        compiler_params=pltpu.CompilerParams(
            dimension_semantics=("parallel", "arbitrary"),
            vmem_limit_bytes=_vmem_limit(4 * blk, cap)),
    )(x_flat, pool_mat, *param_args)

    # Pass 2: modulation.
    out_flat = pl.pallas_call(
        _coord_att_modulate_kernel,
        out_shape=jax.ShapeDtypeStruct((N, C, HW), x.dtype),
        grid_spec=pltpu.PrefetchScalarGridSpec(
            num_scalar_prefetch=0,
            grid=(N, n_t),
            in_specs=[pl.BlockSpec((1, C, th * W), lambda n, t: (n, 0, t)),
                      pl.BlockSpec((1, C, H), lambda n, t: (n, 0, 0)),
                      pl.BlockSpec((1, C, W), lambda n, t: (n, 0, 0)),
                      pl.BlockSpec((H, th * W), lambda n, t: (0, t)),
                      pl.BlockSpec((W, th * W), lambda n, t: (0, t))],
            out_specs=pl.BlockSpec((1, C, th * W), lambda n, t: (n, 0, t)),
        ),
        compiler_params=pltpu.CompilerParams(
            dimension_semantics=("parallel", "parallel"),
            vmem_limit_bytes=_vmem_limit(4 * blk, cap)),
    )(x_flat, a_h, a_w, e_h, e_w)

    return out_flat.reshape(N, C, H, W)


# ---------------------------------------------------------------------------
# Pure-JAX reference mirroring the PyTorch forward (eval-mode BN).
# ---------------------------------------------------------------------------
def coord_att_ref(x, params, eps=1e-5):
    n, c, h, w = x.shape
    x_h = jnp.mean(x, axis=3, keepdims=True)                                 # (n,c,h,1)
    x_w = jnp.transpose(jnp.mean(x, axis=2, keepdims=True), (0, 1, 3, 2))    # (n,c,w,1)
    y = jnp.concatenate([x_h, x_w], axis=2)                                  # (n,c,h+w,1)
    y = jnp.einsum("mc,nchw->nmhw", params["w1"], y) + params["b1"][None, :, None, None]
    scale = params["bn_gamma"] / jnp.sqrt(params["bn_var"] + eps)
    bias = params["bn_beta"] - params["bn_mean"] * scale
    y = y * scale[None, :, None, None] + bias[None, :, None, None]
    y = y * jnp.clip(y + 3.0, 0.0, 6.0) / 6.0                                # h_swish
    yh = y[:, :, :h, :]
    yw = jnp.transpose(y[:, :, h:, :], (0, 1, 3, 2))
    a_h = jax.nn.sigmoid(jnp.einsum("cm,nmhw->nchw", params["wh"], yh)
                         + params["bh"][None, :, None, None])
    a_w = jax.nn.sigmoid(jnp.einsum("cm,nmhw->nchw", params["ww"], yw)
                         + params["bw"][None, :, None, None])
    return x * a_h * a_w


if __name__ == "__main__":
    N, C, H, W = 2, 4, 16, 16
    reduction = 32
    mip = max(8, C // reduction)   # = 8

    key = jax.random.PRNGKey(0)
    k = jax.random.split(key, 7)
    x = jax.random.normal(k[0], (N, C, H, W), jnp.float32)
    params = {
        "w1": jax.random.normal(k[1], (mip, C), jnp.float32) * 0.3,
        "b1": jax.random.normal(k[2], (mip,), jnp.float32) * 0.1,
        "bn_gamma": 1.0 + 0.1 * jnp.arange(mip, dtype=jnp.float32),
        "bn_beta": 0.05 * jnp.arange(mip, dtype=jnp.float32),
        "bn_mean": 0.01 * jnp.arange(mip, dtype=jnp.float32),
        "bn_var": 1.0 + 0.02 * jnp.arange(mip, dtype=jnp.float32),
        "wh": jax.random.normal(k[3], (C, mip), jnp.float32) * 0.3,
        "bh": jax.random.normal(k[4], (C,), jnp.float32) * 0.1,
        "ww": jax.random.normal(k[5], (C, mip), jnp.float32) * 0.3,
        "bw": jax.random.normal(k[6], (C,), jnp.float32) * 0.1,
    }

    ref = coord_att_ref(x, params)

    # Primary fused single-pass path.
    out = jax.block_until_ready(coord_att(x, params))
    assert out.shape == x.shape and out.dtype == x.dtype
    err_fused = float(jnp.max(jnp.abs(out - ref)))
    assert jnp.allclose(out, ref, atol=5e-3, rtol=5e-3), f"fused max_err={err_fused}"

    # Fallback two-pass, H-tiled path (forced small block budget -> n_t = 2).
    out2 = jax.block_until_ready(
        coord_att(x, params, force_two_pass=True, max_block_bytes=2048))
    err_tiled = float(jnp.max(jnp.abs(out2 - ref)))
    assert jnp.allclose(out2, ref, atol=5e-3, rtol=5e-3), f"tiled max_err={err_tiled}"

    print("KERNEL_OK")
</pallas_src>

<mosaic_0001>
module attributes {stable_mosaic.version = 11 : i64} {
  func.func @_coord_att_fused_kernel(%arg0: i32, %arg1: memref<1x4x256xf32, #tpu.memory_space<vmem>>, %arg2: memref<256x32xf32, #tpu.memory_space<vmem>>, %arg3: memref<16x256xf32, #tpu.memory_space<vmem>>, %arg4: memref<16x256xf32, #tpu.memory_space<vmem>>, %arg5: memref<8x4xf32, #tpu.memory_space<vmem>>, %arg6: memref<8x1xf32, #tpu.memory_space<vmem>>, %arg7: memref<4x8xf32, #tpu.memory_space<vmem>>, %arg8: memref<4x1xf32, #tpu.memory_space<vmem>>, %arg9: memref<4x8xf32, #tpu.memory_space<vmem>>, %arg10: memref<4x1xf32, #tpu.memory_space<vmem>>, %arg11: memref<1x4x256xf32, #tpu.memory_space<vmem>>) attributes {dimension_semantics = [#tpu.dimension_semantics<parallel>], iteration_bounds = array<i64: 2>, scalar_prefetch = 0 : i64, scratch_operands = 0 : i64, tpu.core_type = #tpu.core_type<tc>, window_params = [{transform_indices = @transform_0, window_bounds = array<i64: 1, 4, 256>}, {pipeline_mode = #tpu.pipeline_mode<synchronous>, transform_indices = @transform_1, window_bounds = array<i64: 256, 32>}, {pipeline_mode = #tpu.pipeline_mode<synchronous>, transform_indices = @transform_2, window_bounds = array<i64: 16, 256>}, {pipeline_mode = #tpu.pipeline_mode<synchronous>, transform_indices = @transform_3, window_bounds = array<i64: 16, 256>}, {pipeline_mode = #tpu.pipeline_mode<synchronous>, transform_indices = @transform_4, window_bounds = array<i64: 8, 4>}, {pipeline_mode = #tpu.pipeline_mode<synchronous>, transform_indices = @transform_5, window_bounds = array<i64: 8, 1>}, {pipeline_mode = #tpu.pipeline_mode<synchronous>, transform_indices = @transform_6, window_bounds = array<i64: 4, 8>}, {pipeline_mode = #tpu.pipeline_mode<synchronous>, transform_indices = @transform_7, window_bounds = array<i64: 4, 1>}, {pipeline_mode = #tpu.pipeline_mode<synchronous>, transform_indices = @transform_8, window_bounds = array<i64: 4, 8>}, {pipeline_mode = #tpu.pipeline_mode<synchronous>, transform_indices = @transform_9, window_bounds = array<i64: 4, 1>}, {transform_indices = @transform_10, window_bounds = array<i64: 1, 4, 256>}]} {
    %c0 = arith.constant 0 : index
    %c0_0 = arith.constant 0 : index
    %c0_1 = arith.constant 0 : index
    %0 = vector.load %arg1[%c0, %c0_0, %c0_1] : memref<1x4x256xf32, #tpu.memory_space<vmem>>, vector<1x4x256xf32>
    %1 = vector.shape_cast %0 : vector<1x4x256xf32> to vector<4x256xf32>
    %c0_2 = arith.constant 0 : index
    %c0_3 = arith.constant 0 : index
    %2 = vector.load %arg2[%c0_2, %c0_3] : memref<256x32xf32, #tpu.memory_space<vmem>>, vector<256x32xf32>
    %cst = arith.constant dense<0.000000e+00> : vector<4x32xf32>
    %3 = tpu.matmul %1, %2, %cst {dimension_numbers = #tpu.dot_dimension_numbers<[1], [0], [0], [1], [0, 0, 1, 1], [], []>} : vector<4x256xf32>, vector<256x32xf32>, vector<4x32xf32> -> vector<4x32xf32>
    %c0_4 = arith.constant 0 : index
    %c0_5 = arith.constant 0 : index
    %4 = vector.load %arg5[%c0_4, %c0_5] : memref<8x4xf32, #tpu.memory_space<vmem>>, vector<8x4xf32>
    %cst_6 = arith.constant dense<0.000000e+00> : vector<8x32xf32>
    %5 = tpu.matmul %4, %3, %cst_6 {dimension_numbers = #tpu.dot_dimension_numbers<[1], [0], [0], [1], [0, 0, 1, 1], [], []>} : vector<8x4xf32>, vector<4x32xf32>, vector<8x32xf32> -> vector<8x32xf32>
    %c0_7 = arith.constant 0 : index
    %c0_8 = arith.constant 0 : index
    %6 = vector.load %arg6[%c0_7, %c0_8] : memref<8x1xf32, #tpu.memory_space<vmem>>, vector<8x1xf32>
    %7 = vector.broadcast %6 : vector<8x1xf32> to vector<8x32xf32>
    %8 = arith.addf %5, %7 : vector<8x32xf32>
    %cst_9 = arith.constant 3.000000e+00 : f32
    %9 = vector.broadcast %cst_9 : f32 to vector<8x32xf32>
    %10 = arith.addf %8, %9 : vector<8x32xf32>
    %cst_10 = arith.constant 0.000000e+00 : f32
    %cst_11 = arith.constant 6.000000e+00 : f32
    %11 = vector.broadcast %cst_10 : f32 to vector<8x32xf32>
    %12 = arith.maximumf %11, %10 : vector<8x32xf32>
    %13 = vector.broadcast %cst_11 : f32 to vector<8x32xf32>
    %14 = arith.minimumf %13, %12 : vector<8x32xf32>
    %cst_12 = arith.constant 0.166666672 : f32
    %15 = vector.broadcast %cst_12 : f32 to vector<8x32xf32>
    %16 = arith.mulf %14, %15 : vector<8x32xf32>
    %17 = arith.mulf %8, %16 : vector<8x32xf32>
    %c0_13 = arith.constant 0 : index
    %c0_14 = arith.constant 0 : index
    %18 = vector.load %arg7[%c0_13, %c0_14] : memref<4x8xf32, #tpu.memory_space<vmem>>, vector<4x8xf32>
    %19 = vector.extract_strided_slice %17 {offsets = [0, 0], sizes = [8, 16], strides = [1, 1]} : vector<8x32xf32> to vector<8x16xf32>
    %cst_15 = arith.constant dense<0.000000e+00> : vector<4x16xf32>
    %20 = tpu.matmul %18, %19, %cst_15 {dimension_numbers = #tpu.dot_dimension_numbers<[1], [0], [0], [1], [0, 0, 1, 1], [], []>} : vector<4x8xf32>, vector<8x16xf32>, vector<4x16xf32> -> vector<4x16xf32>
    %c0_16 = arith.constant 0 : index
    %c0_17 = arith.constant 0 : index
    %21 = vector.load %arg8[%c0_16, %c0_17] : memref<4x1xf32, #tpu.memory_space<vmem>>, vector<4x1xf32>
    %22 = vector.broadcast %21 : vector<4x1xf32> to vector<4x16xf32>
    %23 = arith.addf %20, %22 : vector<4x16xf32>
    %24 = arith.negf %23 : vector<4x16xf32>
    %25 = math.exp %24 : vector<4x16xf32>
    %cst_18 = arith.constant 1.000000e+00 : f32
    %26 = vector.broadcast %cst_18 : f32 to vector<4x16xf32>
    %27 = arith.addf %26, %25 : vector<4x16xf32>
    %28 = arith.divf %26, %27 : vector<4x16xf32>
    %c0_19 = arith.constant 0 : index
    %c0_20 = arith.constant 0 : index
    %29 = vector.load %arg9[%c0_19, %c0_20] : memref<4x8xf32, #tpu.memory_space<vmem>>, vector<4x8xf32>
    %30 = vector.extract_strided_slice %17 {offsets = [0, 16], sizes = [8, 16], strides = [1, 1]} : vector<8x32xf32> to vector<8x16xf32>
    %cst_21 = arith.constant dense<0.000000e+00> : vector<4x16xf32>
    %31 = tpu.matmul %29, %30, %cst_21 {dimension_numbers = #tpu.dot_dimension_numbers<[1], [0], [0], [1], [0, 0, 1, 1], [], []>} : vector<4x8xf32>, vector<8x16xf32>, vector<4x16xf32> -> vector<4x16xf32>
    %c0_22 = arith.constant 0 : index
    %c0_23 = arith.constant 0 : index
    %32 = vector.load %arg10[%c0_22, %c0_23] : memref<4x1xf32, #tpu.memory_space<vmem>>, vector<4x1xf32>
    %33 = vector.broadcast %32 : vector<4x1xf32> to vector<4x16xf32>
    %34 = arith.addf %31, %33 : vector<4x16xf32>
    %35 = arith.negf %34 : vector<4x16xf32>
    %36 = math.exp %35 : vector<4x16xf32>
    %cst_24 = arith.constant 1.000000e+00 : f32
    %37 = vector.broadcast %cst_24 : f32 to vector<4x16xf32>
    %38 = arith.addf %37, %36 : vector<4x16xf32>
    %39 = arith.divf %37, %38 : vector<4x16xf32>
    %c0_25 = arith.constant 0 : index
    %c0_26 = arith.constant 0 : index
    %40 = vector.load %arg3[%c0_25, %c0_26] : memref<16x256xf32, #tpu.memory_space<vmem>>, vector<16x256xf32>
    %cst_27 = arith.constant dense<0.000000e+00> : vector<4x256xf32>
    %41 = tpu.matmul %28, %40, %cst_27 {dimension_numbers = #tpu.dot_dimension_numbers<[1], [0], [0], [1], [0, 0, 1, 1], [], []>} : vector<4x16xf32>, vector<16x256xf32>, vector<4x256xf32> -> vector<4x256xf32>
    %c0_28 = arith.constant 0 : index
    %c0_29 = arith.constant 0 : index
    %42 = vector.load %arg4[%c0_28, %c0_29] : memref<16x256xf32, #tpu.memory_space<vmem>>, vector<16x256xf32>
    %cst_30 = arith.constant dense<0.000000e+00> : vector<4x256xf32>
    %43 = tpu.matmul %39, %42, %cst_30 {dimension_numbers = #tpu.dot_dimension_numbers<[1], [0], [0], [1], [0, 0, 1, 1], [], []>} : vector<4x16xf32>, vector<16x256xf32>, vector<4x256xf32> -> vector<4x256xf32>
    %44 = arith.mulf %1, %41 : vector<4x256xf32>
    %45 = arith.mulf %44, %43 : vector<4x256xf32>
    %c0_31 = arith.constant 0 : index
    %c0_32 = arith.constant 0 : index
    %c0_33 = arith.constant 0 : index
    %46 = vector.load %arg11[%c0_31, %c0_32, %c0_33] : memref<1x4x256xf32, #tpu.memory_space<vmem>>, vector<1x4x256xf32>
    %47 = vector.shape_cast %46 : vector<1x4x256xf32> to vector<4x256xf32>
    %48 = vector.shape_cast %45 : vector<4x256xf32> to vector<1x4x256xf32>
    tpu.vector_store %arg11[%c0_31, %c0_32, %c0_33], %48 {strides = array<i32>} : memref<1x4x256xf32, #tpu.memory_space<vmem>>, vector<1x4x256xf32>,
    return
  }
  func.func @transform_0(%arg0: i32) -> (i32, i32, i32) {
    %c0_i32 = arith.constant 0 : i32
    %c0_i32_0 = arith.constant 0 : i32
    %c0_i32_1 = arith.constant 0 : i32
    return %arg0, %c0_i32, %c0_i32_0 : i32, i32, i32
  }
  func.func @transform_1(%arg0: i32) -> (i32, i32) {
    %c0_i32 = arith.constant 0 : i32
    %c0_i32_0 = arith.constant 0 : i32
    %c0_i32_1 = arith.constant 0 : i32
    return %c0_i32, %c0_i32_0 : i32, i32
  }
  func.func @transform_2(%arg0: i32) -> (i32, i32) {
    %c0_i32 = arith.constant 0 : i32
    %c0_i32_0 = arith.constant 0 : i32
    %c0_i32_1 = arith.constant 0 : i32
    return %c0_i32, %c0_i32_0 : i32, i32
  }
  func.func @transform_3(%arg0: i32) -> (i32, i32) {
    %c0_i32 = arith.constant 0 : i32
    %c0_i32_0 = arith.constant 0 : i32
    %c0_i32_1 = arith.constant 0 : i32
    return %c0_i32, %c0_i32_0 : i32, i32
  }
  func.func @transform_4(%arg0: i32) -> (i32, i32) {
    %c0_i32 = arith.constant 0 : i32
    %c0_i32_0 = arith.constant 0 : i32
    %c0_i32_1 = arith.constant 0 : i32
    return %c0_i32, %c0_i32_0 : i32, i32
  }
  func.func @transform_5(%arg0: i32) -> (i32, i32) {
    %c0_i32 = arith.constant 0 : i32
    %c0_i32_0 = arith.constant 0 : i32
    %c0_i32_1 = arith.constant 0 : i32
    return %c0_i32, %c0_i32_0 : i32, i32
  }
  func.func @transform_6(%arg0: i32) -> (i32, i32) {
    %c0_i32 = arith.constant 0 : i32
    %c0_i32_0 = arith.constant 0 : i32
    %c0_i32_1 = arith.constant 0 : i32
    return %c0_i32, %c0_i32_0 : i32, i32
  }
  func.func @transform_7(%arg0: i32) -> (i32, i32) {
    %c0_i32 = arith.constant 0 : i32
    %c0_i32_0 = arith.constant 0 : i32
    %c0_i32_1 = arith.constant 0 : i32
    return %c0_i32, %c0_i32_0 : i32, i32
  }
  func.func @transform_8(%arg0: i32) -> (i32, i32) {
    %c0_i32 = arith.constant 0 : i32
    %c0_i32_0 = arith.constant 0 : i32
    %c0_i32_1 = arith.constant 0 : i32
    return %c0_i32, %c0_i32_0 : i32, i32
  }
  func.func @transform_9(%arg0: i32) -> (i32, i32) {
    %c0_i32 = arith.constant 0 : i32
    %c0_i32_0 = arith.constant 0 : i32
    %c0_i32_1 = arith.constant 0 : i32
    return %c0_i32, %c0_i32_0 : i32, i32
  }
  func.func @transform_10(%arg0: i32) -> (i32, i32, i32) {
    %c0_i32 = arith.constant 0 : i32
    %c0_i32_0 = arith.constant 0 : i32
    %c0_i32_1 = arith.constant 0 : i32
    return %arg0, %c0_i32, %c0_i32_0 : i32, i32, i32
  }
}

</mosaic_0001>

<bundles_post_ra>
// kernel: tpu_custom_call.1
= control target key start
LH: loop header
LB: loop body
LE: loop exit
PB: predicated region body
PF: predicated region fallthrough
CT: control target
= control target key end

     0   :  { %15 = vsyncpa [#allocation3], 0  ;;  %s1526_s0 = inlined_call_operand.vmem [shape: f32[2,4,256], index: 0, kind: input, shape index: {}]   ;;  %s1527_s1 = inlined_call_operand.vmem [shape: f32[256,32], index: 1, kind: input, shape index: {}]   ;;  %s1528_s2 = inlined_call_operand.vmem [shape: f32[16,256], index: 2, kind: input, shape index: {}]   ;;  %s1529_s3 = inlined_call_operand.vmem [shape: f32[16,256], index: 3, kind: input, shape index: {}]   ;;  %s1530_s4 = inlined_call_operand.vmem [shape: f32[8,4], index: 4, kind: input, shape index: {}]   ;;  %s1531_s5 = inlined_call_operand.vmem [shape: f32[8,1], index: 5, kind: input, shape index: {}]   ;;  %s1532_s6 = inlined_call_operand.vmem [shape: f32[4,8], index: 6, kind: input, shape index: {}]   ;;  %s1533_s7 = inlined_call_operand.vmem [shape: f32[4,1], index: 7, kind: input, shape index: {}]   ;;  %s1534_s8 = inlined_call_operand.vmem [shape: f32[4,8], index: 8, kind: input, shape index: {}]   ;;  %s1535_s9 = inlined_call_operand.vmem [shape: f32[4,1], index: 9, kind: input, shape index: {}]   ;;  %s1536_s10 = inlined_call_operand.hbm [shape: f32[2,4,256], index: 10, kind: output, shape index: {}]  }
   0x1   :  { %17 = vsyncpa [#allocation3 + $0x1], 0  ;;  %s1269_s13 = smov 0   ;;  %s1271_s14 = smov 0  }
   0x2   :  { %s1273_s15 = smov 0   ;;  %s1275_s16 = smov 0  }
   0x3 LB: > { %s1290_s17 = sadd.s32 4294967295, %s1207_s16   ;;  %s973_s18 = sadd.s32 4294967294, %s1207_s16   ;;  %s1207_s16 = sphi %s1275_s16, %s1544_s16   ;;  %s1203_s15 = sphi %s1273_s15, %s1543_s15   ;;  %s1199_s14 = sphi %s1271_s14, %s1542_s14   ;;  %s1195_s13 = sphi %s1269_s13, %s1541_s13  }
   0x4   : > { %s1294_s19 = sadd.s32 1, %s1207_s16   ;;  %s245_s20 = sadd.s32 1, %s1203_s15 }
   0x5   : > { %s242_s21 = ssub.s32 %s1207_s16, %s1294_s19  ;;  %p255_p0 = scmp.ne.s32.totalorder %s1203_s15, %s1199_s14 }
   0x6   : > { %p243_p1 = scmp.eq.s32.totalorder %s242_s21, 0  ;;  %p256_p2 = scmp.eq.s32.totalorder %s1290_s17, 1 }
   0x7   : > { %p261_p3 = scmp.ne.s32.totalorder %s1199_s14, %s1195_s13  ;;  %p262_p4 = scmp.eq.s32.totalorder %s973_s18, 1 }
   0x8   : > { %s1305_s22 = scalar_select %p243_p1, %s1203_s15, %s245_s20  }
   0x9   : > { %p1307_p5 = por %p256_p2, %p255_p0  ;;  %p1311_p6 = por %p262_p4, %p261_p3 }
   0xa   : > { %1537 = sst [smem:[#allocation5_spill]] %s1305_s22  ;;  %p976_p7 = scmp.ge.s32.totalorder %s1207_s16, 1 }
   0xb   : > { %p315_p8 = scmp.lt.s32.totalorder %s1207_s16, 3 }
   0xd   : > { %p316_p9 = pnand %p976_p7, %p315_p8 }
   0xe   : > { %v375_v0 = vld [vmem:[%s1527_s1 + $0x80] sm:$0xff] (!%p316_p9)  ;;  %v376_v1 = vld [vmem:[%s1527_s1 + $0x88] sm:$0xff] (!%p316_p9)  ;;  %p353_p10 = scmp.lt.s32.totalorder (!%p316_p9), %s1290_s17, 1  ;;  %v377_v5 = vld [vmem:[%s1527_s1 + $0x90] sm:$0xff] (!%p316_p9)  ;;  %v1209_v50 = vmov (!%p316_p9), 0.0   ;;  %vm1210_vm0 = vmmov (!%p316_p9), 0  }
   0xf   : > { %319 = sbr.rel (%p316_p9) target bundleno = 1076 (0x434), region = 60  ;;  %v359_v2 = vld [vmem:[%s1527_s1] sm:$0xff] (!%p316_p9)  ;;  %v1051_v3 = vpack.c.bf16 (!%p316_p9), %v376_v1, %v375_v0  ;;  %v360_v4 = vld [vmem:[%s1527_s1 + $0x8] sm:$0xff] (!%p316_p9)  ;;  %v378_v6 = vld [vmem:[%s1527_s1 + $0x98] sm:$0xff] (!%p316_p9)  ;;  %1036 = vmatprep.subr.mxu1 (!%p316_p9), %v1209_v50  ;;  %1038 = vmatprep.mubr.msk.f32.mxu1 (!%p316_p9), %vm1210_vm0, %v1209_v50  ;;  %v1211_v52 = vmov (!%p316_p9), 0   ;;  %vm475_vm1 = vcmask (!%p316_p9), 1043456  }
  0x10   : > { %v1053_v7 = vpack.c.bf16 (!%p316_p9), %v360_v4, %v359_v2  ;;  %v1055_v8 = vpack.c.bf16 (!%p316_p9), %v378_v6, %v377_v5  ;;  %v361_v9 = vld [vmem:[%s1527_s1 + $0x10] sm:$0xff] (!%p316_p9)  ;;  %v362_v10 = vld [vmem:[%s1527_s1 + $0x18] sm:$0xff] (!%p316_p9)  ;;  %v379_v11 = vld [vmem:[%s1527_s1 + $0xa0] sm:$0xff] (!%p316_p9)  ;;  %1134 = vset.pattern.permute.xlu0 (!%p316_p9), %v1211_v52  ;;  %1135 = vset.pattern.permute.xlu1 (!%p316_p9), %v1211_v52  ;;  %vm471_vm2 = vcmask (!%p316_p9), 31744   ;;  %vm561_vm3 = vcmask (!%p316_p9), 64512   ;;  %s350_s30 = sand.u32 (!%p316_p9), 1, %s1199_s14  }
  0x11   : > { %1052 = vmatprep.subr.bf16.mxu0 (!%p316_p9), %v1051_v3  ;;  %v380_v12 = vld [vmem:[%s1527_s1 + $0xa8] sm:$0xff] (!%p316_p9)  ;;  %v1057_v13 = vpack.c.bf16 (!%p316_p9), %v362_v10, %v361_v9  ;;  %v363_v15 = vld [vmem:[%s1527_s1 + $0x20] sm:$0xff] (!%p316_p9)  ;;  %v381_v17 = vld [vmem:[%s1527_s1 + $0xb0] sm:$0xff] (!%p316_p9)  ;;  %vm735_vm4 = vcmask (!%p316_p9), 130048   ;;  %s977_s11 = sshll.u32 (!%p316_p9), %s350_s30, 3  ;;  %s994_s18 = sshll.u32 (!%p316_p9), %s1290_s17, 7 }
  0x12   : > { %1054 = vmatpush3.bf16.msra.mxu0 (!%p316_p9), %v1053_v7  ;;  %v1059_v14 = vpack.c.bf16 (!%p316_p9), %v380_v12, %v379_v11  ;;  %v364_v16 = vld [vmem:[%s1527_s1 + $0x28] sm:$0xff] (!%p316_p9)  ;;  %v382_v18 = vld [vmem:[%s1527_s1 + $0xb8] sm:$0xff] (!%p316_p9)  ;;  %v365_v21 = vld [vmem:[%s1527_s1 + $0x30] sm:$0xff] (!%p316_p9)  ;;  %s1484_s26 = scalar_lea.hbm (!%p316_p9), %s1536_s10, %s994_s18  ;;  %s900_s27 = scalar_lea.sflag (!%p316_p9), [#allocation3], %s350_s30 }
  0x13   : > { %1056 = vmatprep.subr.bf16.mxu0 (!%p316_p9), %v1055_v8  ;;  %v1061_v19 = vpack.c.bf16 (!%p316_p9), %v364_v16, %v363_v15  ;;  %v1063_v20 = vpack.c.bf16 (!%p316_p9), %v382_v18, %v381_v17  ;;  %v366_v22 = vld [vmem:[%s1527_s1 + $0x38] sm:$0xff] (!%p316_p9)  ;;  %v383_v23 = vld [vmem:[%s1527_s1 + $0xc0] sm:$0xff] (!%p316_p9)  ;;  %v384_v24 = vld [vmem:[%s1527_s1 + $0xc8] sm:$0xff] (!%p316_p9) }
  0x14   : > { %v1065_v27 = vpack.c.bf16 (!%p316_p9), %v366_v22, %v365_v21  ;;  %v1067_v28 = vpack.c.bf16 (!%p316_p9), %v384_v24, %v383_v23  ;;  %v367_v29 = vld [vmem:[%s1527_s1 + $0x40] sm:$0xff] (!%p316_p9)  ;;  %v368_v30 = vld [vmem:[%s1527_s1 + $0x48] sm:$0xff] (!%p316_p9)  ;;  %v385_v31 = vld [vmem:[%s1527_s1 + $0xd0] sm:$0xff] (!%p316_p9) }
  0x15   : > { %v386_v32 = vld [vmem:[%s1527_s1 + $0xd8] sm:$0xff] (!%p316_p9)  ;;  %v1069_v33 = vpack.c.bf16 (!%p316_p9), %v368_v30, %v367_v29  ;;  %v369_v35 = vld [vmem:[%s1527_s1 + $0x50] sm:$0xff] (!%p316_p9)  ;;  %v387_v37 = vld [vmem:[%s1527_s1 + $0xe0] sm:$0xff] (!%p316_p9) }
  0x16   : > { %s354_s12 = scalar_select %p353_p10, %s1290_s17, 1  ;;  %1058 = vmatpush3.bf16.msra.mxu0 %v1057_v13  ;;  %v1071_v34 = vpack.c.bf16 %v386_v32, %v385_v31  ;;  %v370_v36 = vld [vmem:[%s1527_s1 + $0x58] sm:$0xff]  ;;  %v388_v38 = vld [vmem:[%s1527_s1 + $0xe8] sm:$0xff]  ;;  %v371_v41 = vld [vmem:[%s1527_s1 + $0x60] sm:$0xff] }
  0x17   : > { %1060 = vmatprep.subr.bf16.mxu0 %v1059_v14  ;;  %v1073_v39 = vpack.c.bf16 %v370_v36, %v369_v35  ;;  %v1075_v40 = vpack.c.bf16 %v388_v38, %v387_v37  ;;  %v372_v42 = vld [vmem:[%s1527_s1 + $0x68] sm:$0xff]  ;;  %v389_v43 = vld [vmem:[%s1527_s1 + $0xf0] sm:$0xff]  ;;  %v390_v44 = vld [vmem:[%s1527_s1 + $0xf8] sm:$0xff]  ;;  %s1213_s17 = smov [#allocation2]  }
  0x18   : > { %s993_s21 = sshll.u32 %s354_s12, 3  ;;  %v1077_v45 = vpack.c.bf16 %v372_v42, %v371_v41  ;;  %v1079_v46 = vpack.c.bf16 %v390_v44, %v389_v43  ;;  %v373_v47 = vld [vmem:[%s1527_s1 + $0x70] sm:$0xff]  ;;  %v374_v48 = vld [vmem:[%s1527_s1 + $0x78] sm:$0xff]  ;;  %v465_v51 = vld [vmem:[%s1531_s5] sm:$0xff]  ;;  %s1212_s12 = smov 112  }
  0x19   : > { %s357_s22 = scalar_lea.vmem %s1526_s0, %s993_s21  ;;  %v1081_v49 = vpack.c.bf16 %v374_v48, %v373_v47  ;;  %468 = vperm.xlu0 %1134, %v465_v51   ;;  %v464_v56 = vld [vmem:[%s1530_s4] sm:$0xff]  ;;  %v732_v12 = vld [vmem:[%s1528_s2 + $0x8] sm:$0xff]  ;;  %v734_v13 = vld [vmem:[%s1528_s2 + $0x18] sm:$0xff]  ;;  %s352_s21 = scalar_lea.vmem [#allocation2], %s977_s11 }
  0x1a   : > { %v1376_v25 = vld [vmem:[%s357_s22] sm:$0xff]  ;;  %1062 = vmatpush3.bf16.msra.mxu0 %v1061_v19  ;;  %v1083_v14 = vpack.c.bf16 %v734_v13, %v732_v12  ;;  %v733_v16 = vld [vmem:[%s1528_s2 + $0x10] sm:$0xff]  ;;  %v811_v17 = vld [vmem:[%s1529_s3 + $0x8] sm:$0xff]  ;;  %s914_s20 = sshll.u32 %s352_s21, 4  ;;  %s1149_s28 = sshll.u32 %s1213_s17, 4  ;;  %s1486_s20 = int_to_ptr.vmem [resolvable:$true] %s914_s20  ;;  %s1150_s28 = int_to_ptr.vmem [resolvable:$false] %s1149_s28 }
  0x1b   : > { %v392_v26 = vcombine.high %v1376_v25, %v1376_v25  ;;  %1064 = vmatprep.subr.bf16.mxu0 %v1063_v20  ;;  %v555_v61 = vld [vmem:[%s1533_s7] sm:$0xf]  ;;  %v813_v19 = vld [vmem:[%s1529_s3 + $0x18] sm:$0xff]  ;;  %v812_v24 = vld [vmem:[%s1529_s3 + $0x10] sm:$0xff]  ;;  %s1145_s22 = scalar_lea.vmem %s1486_s20, 128  ;;  %s1151_s29 = scalar_lea.vmem %s1150_s28, 256 }
  0x1c   : > { %558 = vperm.xlu1 %1135, %v555_v61   ;;  %v642_v63 = vld [vmem:[%s1535_s9] sm:$0xf]  ;;  %v1087_v20 = vpack.c.bf16 %v813_v19, %v811_v17  ;;  %p1146_p11 = scmp.ne.s32.totalorder %s1486_s20, %s1145_s22  ;;  %p1152_p0 = scmp.lt.s32.totalorder %s1486_s20, %s1150_s28 }
  0x1d   : > { %458 = vmatprep.mubr.f32.mxu0 %v392_v26  ;;  %v554_v4 = vld [vmem:[%s1532_s6] sm:$0xf]  ;;  %p1153_p1 = scmp.lt.s32.totalorder %s1151_s29, %s1145_s22 }
  0x1e   : > { %1066 = vmatpush3.bf16.msra.mxu0 %v1065_v27  ;;  %v641_v5 = vld [vmem:[%s1534_s8] sm:$0xf]  ;;  %p1147_p12 = pnand %p1146_p11, %p1307_p5 }
  0x1f   : > { %1068 = vmatprep.subr.bf16.mxu0 %v1067_v28  ;;  %v731_v15 = vld [vmem:[%s1528_s2] sm:$0xff]  ;;  %p1154_p2 = por %p1153_p1, %p1152_p0 }
  0x20   : > { %645 = vperm.xlu1 %1135, %v642_v63   ;;  %v1085_v18 = vpack.c.bf16 %v733_v16, %v731_v15  ;;  %v810_v23 = vld [vmem:[%s1529_s3] sm:$0xff]  ;;  %p1148_p13 = pneg %p1147_p12 }
  0x21   : > { %v1089_v26 = vpack.c.bf16 %v812_v24, %v810_v23 }
  0x22   : > { %1070 = vmatpush3.bf16.msra.mxu0 %v1069_v33  ;;  %p1155_p3 = pnand %p1154_p2, %p1148_p13 }
  0x23   : > { %1072 = vmatprep.subr.bf16.mxu0 %v1071_v34 }
  0x26   : > { %1074 = vmatpush3.bf16.msra.mxu0 %v1073_v39 }
  0x27   : > { %1076 = vmatprep.subr.bf16.mxu0 %v1075_v40 }
  0x2a   : > { %1078 = vmatpush3.bf16.msra.mxu0 %v1077_v45 }
  0x2b   : > { %1080 = vmatprep.subr.bf16.mxu0 %v1079_v46 }
  0x2e   : > { %1082 = vmatpush3.bf16.msra.mxu0 %v1081_v49 }
  0x31   : > { %459 = vmatmul.mubr.f32.vlgmr.msra.gmra.mrb[0].mxu0 %v1376_v25 }
  0x98   : > { %v469_v57 = vpop.permute.xlu0 %468 }
  0x9b   : > { %v559_v7 = vpop.permute.xlu1 %558 }
  0x9f   : > { %v646_v28 = vpop.permute.xlu1 %645 }
 0x104   : > { %v1027_v53 = vpop.f32.mrb[0].mxu0 }
 0x105   : > { %v1028_v54 = vpop.f32.mrb[1].mxu0 }
 0x106   : > { %v1029_v55 = vadd.f32 %v1028_v54, %v1027_v53 }
 0x108   : > { %1037 = vmatpush3.msk.msra.mxu1 %vm475_vm1, %v1029_v55 }
 0x109   : > { %1039 = vmatmul.mubr.msk.f32.vlgmr.msra.gmra.mrb[0].mxu1 %vm471_vm2, %v464_v56  ;;  %1041 = vmatprep.subr.mxu1 %v1209_v50 }
 0x10a   : > { %1043 = vmatprep.mubr.msk.f32.mxu1 %vm1210_vm0, %v1209_v50 }
 0x1dc   : > { %v545_v58 = vpop.f32.mrb[0].mxu1 }
 0x1dd   : > { %v546_v59 = vadd.f32 %v545_v58, %v469_v57  ;;  %v1040_v60 = vpop.f32.mrb[1].mxu1 }
 0x1df   : > { %v549_v62 = vadd.f32 3.0, %v546_v59 }
 0x1e1   : > { %v550_v0 = vmax.f32 %v549_v62, 0.0 }
 0x1e3   : > { %v551_v1 = vmin.f32 %v550_v0, 6.0 }
 0x1e5   : > { %v552_v2 = vmul.f32 0.16666667, %v551_v1 }
 0x1e7   : > { %v553_v3 = vmul.f32 %v552_v2, %v546_v59 }
 0x1e9   : > { %649 = vrot.lane.b32.xlu0 %v553_v3, %s1212_s12  ;;  %1042 = vmatpush3.msra.mxu1 %v553_v3 }
 0x1ea   : > { %1044 = vmatmul.mubr.msk.f32.vlgmr.msra.gmra.mrb[2].mxu1 %vm561_vm3, %v554_v4  ;;  %1046 = vmatprep.subr.mxu1 %v1209_v50 }
 0x1eb   : > { %1048 = vmatprep.mubr.msk.f32.mxu1 %vm1210_vm0, %v1209_v50 }
 0x25b   : > { %v650_v6 = vpop.permute.xlu0 %649 }
 0x25c   : > { %1047 = vmatpush3.msra.mxu1 %v650_v6 }
 0x25d   : > { %1049 = vmatmul.mubr.msk.f32.vlgmr.msra.gmra.mrb[4].mxu1 %vm561_vm3, %v641_v5  ;;  %1084 = vmatprep.subr.bf16.mxu1 %v1083_v14 }
 0x25e   : > { %803 = vmatprep.mubr.f32.mxu1 %v1209_v50  ;;  %1086 = vmatpush1.bf16.msra.mxu1 %v1085_v18 }
 0x25f   : > { %1088 = vmatprep.subr.bf16.mxu1 %v1087_v20 }
 0x2bd   : > { %v631_v8 = vpop.f32.mrb[2].mxu1 }
 0x2be   : > { %v632_v9 = vadd.f32 %v631_v8, %v559_v7  ;;  %v1045_v10 = vpop.f32.mrb[3].mxu1 }
 0x2c0   : > { %v983_v11 = vmul.f32 -1.442695, %v632_v9 }
 0x2c2   : > { %1137 = vpow2.f32 %v983_v11 }
 0x2cc   : > { %v1138_v21 = vpop.eup %1137 }
 0x2cd   : > { %v638_v22 = vadd.f32 1.0, %v1138_v21 }
 0x2cf   : > { %1139 = vrcp.f32 %v638_v22 }
 0x2d9   : > { %v1140_v27 = vpop.eup %1139 }
 0x2da   : > { %986 = vmatmul.mubr.msk.f32.vlgmr.msra.gmra.mrb[6].mxu1 %vm735_vm4, %v1140_v27 }
 0x2db   : > { %1090 = vmatpush1.bf16.msra.mxu1 %v1089_v26  ;;  %881 = vmatprep.mubr.f32.mxu1 %v1209_v50 }
 0x330   : > { %v721_v29 = vpop.f32.mrb[4].mxu1 }
 0x331   : > { %v722_v30 = vadd.f32 %v721_v29, %v646_v28  ;;  %v1050_v31 = vpop.f32.mrb[5].mxu1 }
 0x333   : > { %v985_v32 = vmul.f32 -1.442695, %v722_v30 }
 0x335   : > { %1141 = vpow2.f32 %v985_v32 }
 0x33f   : > { %v1142_v33 = vpop.eup %1141 }
 0x340   : > { %v728_v34 = vadd.f32 1.0, %v1142_v33 }
 0x342   : > { %1143 = vrcp.f32 %v728_v34 }
 0x34c   : > { %v1144_v35 = vpop.eup %1143 }
 0x34d   : > { %987 = vmatmul.mubr.msk.f32.vlgmr.msra.gmra.mrb[8].mxu1 %vm735_vm4, %v1144_v35 }
 0x3ad   : > { %v805_v36 = vpop.f32.mrb[6].mxu1 }
 0x3ae   : > { %v807_v37 = vpop.f32.mrb[7].mxu1 }
 0x3af   : > { %v890_v38 = vcombine.low %v805_v36, %v807_v37 }
 0x3b1   : > { %v892_v41 = vmul.f32 %v890_v38, %v1376_v25 }
 0x420   : > { %v883_v39 = vpop.f32.mrb[8].mxu1 }
 0x421   : > { %v885_v40 = vpop.f32.mrb[9].mxu1 }
 0x422   : > { %v895_v42 = vcombine.low %v883_v39, %v885_v40 }
 0x424   : > { %v897_v43 = vmul.f32 %v895_v42, %v892_v41 }
 0x426   : > { %898 = vst [vmem:[%s352_s21] sm:$0xff] %v897_v43 }
 0x427   : > { %1158 = shalt.err (!%p1155_p3)
}
 0x428   : > { %s1159_s30 = scalar_lea.hbm %s1484_s26, 128  ;;  %s1163_s21 = scalar_lea.hbm %s1536_s10, 256 }
 0x429   : > { %p1160_p4 = scmp.ne.s32.totalorder %s1484_s26, %s1159_s30  ;;  %p1164_p9 = scmp.lt.u32.totalorder %s1484_s26, %s1536_s10 }
 0x42a   : > { %p1165_p10 = scmp.lt.u32.totalorder %s1163_s21, %s1159_s30  ;;  %p1167_p12 = scmp.lt.u32.totalorder %s1159_s30, %s1484_s26 }
 0x42b   : > { %p1161_p7 = pnand %p1160_p4, %p1307_p5 }
 0x42c   : > { %p1166_p11 = por %p1165_p10, %p1164_p9 }
 0x42d   : > { %p1162_p8 = pneg %p1161_p7 }
 0x42e   : > { %p1168_p13 = por %p1167_p12, %p1166_p11 }
 0x430   : > { %p1169_p0 = pnand %p1168_p13, %p1162_p8 }
 0x432   : > { %1172 = shalt.err (!%p1169_p0)
}
 0x433   : > { %1091 = dma.vmem_to_hbm [thread:$0]  (%p1307_p5), %s1486_s20, 128, %s1484_s26, %s900_s27  }
 0x434 PF: > { %p1097_p1 = scmp.ge.s32.totalorder %s1207_s16, 2  ;;  %s926_s22 = sand.u32 1, %s1195_s13  }
 0x435   : > { %s927_s17 = scalar_lea.sflag [#allocation3], %s926_s22 }
 0x436   : > { %p1094_p2 = pnand %p1097_p1, %p1311_p6 }
 0x438   : > { %1190 = dma.done.wait (!%p1094_p2), %s927_s17, 128  }
 0x439   : > { %1192 = vsyncadd (!%p1094_p2), %s927_s17, 4294967168  ;;  %s1540_s28 = sld [smem:[#allocation5_spill]]  ;;  %p20_p3 = scmp.ge.s32.totalorder %s1294_s19, 4  }
 0x43a   : > { %s1541_s13 = smov %s1199_s14  ;;  %s1542_s14 = smov %s1203_s15 }
 0x43b   : > { %s1544_s16 = smov %s1294_s19  ;;  %22 = sbr.rel (!%p20_p3) target bundleno = 3 (0x3), region = 95 }
 0x43f   : > { %s1543_s15 = smov %s1540_s28 }
 0x442   :  { %932 = vsyncpa [#allocation3], 1 }
 0x443   :  { %934 = vsyncpa [#allocation3 + $0x1], 1 }

</bundles_post_ra>
